<compile_context>
chip_gen: v7x
topology: tpu7x:2x2x1
jax: 0.10.0
libtpu: 0.0.40
codegen_flags: <defaults>
</compile_context>

<pallas_src>
import functools

import jax
import jax.numpy as jnp
from jax.experimental import pallas as pl
from jax.experimental.pallas import tpu as pltpu


def _pow_static(x, gamma):
    """(x ** gamma) with a static Python gamma; multiplies for small ints."""
    g = float(gamma)
    if g.is_integer() and 0 <= int(g) <= 4:
        gi = int(g)
        if gi == 0:
            return jnp.ones_like(x)
        out = x
        for _ in range(gi - 1):
            out = out * x
        return out
    return jnp.power(x, g)


def _focal_loss_kernel(logits_ref, target_ref, weight_ref, num_ref, cnt_ref,
                       *, gamma, ignore_index, n_valid, tile_n):
    i = pl.program_id(0)

    x = logits_ref[...].astype(jnp.float32)          # (C, TILE_N)
    c, tn = x.shape
    w = weight_ref[...].astype(jnp.float32)          # (C, 1)
    tgt = target_ref[...]                            # (1, TILE_N) int32

    # log_softmax over the class axis (sublanes, axis 0).
    m = jnp.max(x, axis=0, keepdims=True)            # (1, TILE_N)
    z = x - m
    lse = jnp.log(jnp.sum(jnp.exp(z), axis=0, keepdims=True))   # (1, TILE_N)

    # Gather the target class FIRST (one-hot over the 10 sublanes), then run
    # the focal modulation only on the gathered (1, TILE_N) values.
    cls = jax.lax.broadcasted_iota(jnp.int32, (c, tn), 0)
    onehot = cls == tgt                                               # (C, TILE_N)
    z_t = jnp.sum(jnp.where(onehot, z, 0.0), axis=0, keepdims=True)  # (1, TILE_N)
    w_t = jnp.sum(jnp.where(onehot, w, 0.0), axis=0, keepdims=True)  # (1, TILE_N)

    logpt_t = z_t - lse                               # log p_t of target class
    pt_t = jnp.exp(logpt_t)
    mod_t = _pow_static(1.0 - pt_t, gamma) * logpt_t * w_t

    # Validity: not ignore_index AND inside the real (un-padded) batch.
    # Out-of-range lanes of a ragged last tile contain garbage; they are
    # masked out here (NaNs in masked lanes are dropped by the select).
    lane = jax.lax.broadcasted_iota(jnp.int32, (1, tn), 1)
    in_range = (i * tile_n + lane) < n_valid
    valid = (tgt != ignore_index) & in_range          # (1, TILE_N) bool

    per_sample = jnp.where(valid, -mod_t, 0.0)

    p_num = jnp.sum(per_sample, axis=1, keepdims=True)                    # (1, 1)
    p_cnt = jnp.sum(valid.astype(jnp.float32), axis=1, keepdims=True)     # (1, 1)

    # Per-tile partial outputs (race-free under "parallel" grid semantics);
    # the (1, 8, 128) blocks keep the stores layout-legal and lane-dense.
    num_ref[...] = jnp.broadcast_to(p_num.reshape(1, 1, 1), num_ref.shape)
    cnt_ref[...] = jnp.broadcast_to(p_cnt.reshape(1, 1, 1), cnt_ref.shape)


def focal_loss(logits, target, weight, gamma=2.0, ignore_index=-100,
               tile_n=65536, input_dtype=jnp.bfloat16):
    """logits: (N, C); target: (N,) int; weight: (C,) float -> scalar loss."""
    n, c = logits.shape

    # Single fused layout pass: transpose to (C, N) + cast (default bf16).
    # No separate padding pass -- the kernel masks the ragged tail itself.
    x = logits.T.astype(input_dtype)                  # (C, N)
    tgt = target.reshape(1, n).astype(jnp.int32)      # (1, N)
    w = weight.reshape(c, 1).astype(jnp.float32)      # (C, 1)

    # Lane-aligned tile, clamped so tiny batches use a single small tile.
    tile_n = max(128, (int(tile_n) // 128) * 128)
    tile_n = min(tile_n, -(-n // 128) * 128)
    num_tiles = -(-n // tile_n)

    kernel = functools.partial(_focal_loss_kernel, gamma=gamma,
                               ignore_index=ignore_index, n_valid=n,
                               tile_n=tile_n)

    num_out, cnt_out = pl.pallas_call(
        kernel,
        out_shape=(
            jax.ShapeDtypeStruct((num_tiles, 8, 128), jnp.float32),
            jax.ShapeDtypeStruct((num_tiles, 8, 128), jnp.float32),
        ),
        grid_spec=pltpu.PrefetchScalarGridSpec(
            num_scalar_prefetch=0,
            grid=(num_tiles,),
            in_specs=[
                pl.BlockSpec((c, tile_n), lambda i: (0, i)),   # logits (C, N)
                pl.BlockSpec((1, tile_n), lambda i: (0, i)),   # targets (1, N)
                pl.BlockSpec((c, 1), lambda i: (0, 0)),        # weights (C, 1)
            ],
            out_specs=[
                pl.BlockSpec((1, 8, 128), lambda i: (i, 0, 0)),  # partial num
                pl.BlockSpec((1, 8, 128), lambda i: (i, 0, 0)),  # partial cnt
            ],
        ),
        compiler_params=pltpu.CompilerParams(
            # Per-tile independent partial outputs -> safe to shard tiles
            # across TensorCores (v7x megacore); no-op on v5e/v6e.
            dimension_semantics=("parallel",),
            # Headroom for the 64K-sample tile + f32 intermediates on all
            # generations (fits under v7x's 64 MiB physical VMEM).
            vmem_limit_bytes=48 * 1024 * 1024,
        ),
    )(x, tgt, w)

    num = jnp.sum(num_out[:, 0, 0])
    cnt = jnp.sum(cnt_out[:, 0, 0])
    # nll_loss reduction='mean' over non-ignored samples (0/0 -> NaN if all
    # targets are ignore_index, matching PyTorch).
    return num / cnt


def make_focal_weight(vocab_size=10, vocab_shift=5, alpha=None):
    """Replicates FocalLoss.__init__ weight construction."""
    if alpha is None:
        alpha = jnp.ones((vocab_size - vocab_shift,), jnp.float32)
    alphas = jnp.ones((vocab_size,), jnp.float32)
    alphas = alphas.at[vocab_shift:].set(alpha)
    return alphas / jnp.sum(alphas) * vocab_size


def focal_loss_ref(logits, target, weight, gamma=2.0, ignore_index=-100):
    """Plain-JAX reference for validation."""
    logpt = jax.nn.log_softmax(logits.astype(jnp.float32), axis=1)
    pt = jnp.exp(logpt)
    mod = ((1.0 - pt) ** gamma) * logpt * weight[None, :]
    picked = jnp.take_along_axis(
        mod, jnp.clip(target, 0, logits.shape[1] - 1)[:, None], axis=1)[:, 0]
    valid = target != ignore_index
    num = jnp.sum(jnp.where(valid, -picked, 0.0))
    cnt = jnp.sum(valid.astype(jnp.float32))
    return num / cnt


if __name__ == "__main__":
    key = jax.random.PRNGKey(0)
    k1, k2, k3, k4 = jax.random.split(key, 4)

    VOCAB, SHIFT = 10, 5
    GAMMA, IGNORE = 2.0, -100
    weight = make_focal_weight(VOCAB, SHIFT,
                               alpha=jnp.array([1, 1, 1, 1, 1], jnp.float32))

    # Small case matching the module defaults (single 128-lane tile).
    N = 8
    logits = jax.random.normal(k1, (N, VOCAB), jnp.float32)
    target = jax.random.randint(k2, (N,), 0, VOCAB, jnp.int32)
    target = target.at[3].set(IGNORE)          # exercise ignore_index path

    loss = focal_loss(logits, target, weight, gamma=GAMMA, ignore_index=IGNORE)
    jax.block_until_ready(loss)
    # Kernel default feeds bf16-rounded logits; compare against a reference
    # on the identically rounded values so tolerances stay tight.
    logits_r = logits.astype(jnp.bfloat16).astype(jnp.float32)
    ref = focal_loss_ref(logits_r, target, weight, gamma=GAMMA,
                         ignore_index=IGNORE)
    assert jnp.allclose(loss, ref, rtol=1e-4, atol=1e-5), (loss, ref)

    # f32-input path (no bf16 rounding) against the plain f32 reference.
    loss_f32 = focal_loss(logits, target, weight, gamma=GAMMA,
                          ignore_index=IGNORE, input_dtype=jnp.float32)
    jax.block_until_ready(loss_f32)
    ref_f32 = focal_loss_ref(logits, target, weight, gamma=GAMMA,
                             ignore_index=IGNORE)
    assert jnp.allclose(loss_f32, ref_f32, rtol=1e-5, atol=1e-6), (loss_f32,
                                                                   ref_f32)

    # Multi-tile case with a ragged tail (300 = 2*128 + 44): exercises the
    # "parallel" per-tile partial outputs and the in-kernel tail mask.
    N2 = 300
    logits2 = jax.random.normal(k3, (N2, VOCAB), jnp.float32)
    target2 = jax.random.randint(k4, (N2,), 0, VOCAB, jnp.int32)
    target2 = target2.at[7].set(IGNORE)

    loss2 = focal_loss(logits2, target2, weight, gamma=GAMMA,
                       ignore_index=IGNORE, tile_n=128)
    jax.block_until_ready(loss2)
    logits2_r = logits2.astype(jnp.bfloat16).astype(jnp.float32)
    ref2 = focal_loss_ref(logits2_r, target2, weight, gamma=GAMMA,
                          ignore_index=IGNORE)
    assert jnp.allclose(loss2, ref2, rtol=1e-4, atol=1e-5), (loss2, ref2)

    print("KERNEL_OK")
</pallas_src>

<mosaic_0001>
module attributes {stable_mosaic.version = 11 : i64} {
  func.func @_focal_loss_kernel(%arg0: i32, %arg1: memref<10x128xbf16, #tpu.memory_space<vmem>>, %arg2: memref<1x128xi32, #tpu.memory_space<vmem>>, %arg3: memref<10x1xf32, #tpu.memory_space<vmem>>, %arg4: memref<1x8x128xf32, #tpu.memory_space<vmem>>, %arg5: memref<1x8x128xf32, #tpu.memory_space<vmem>>) attributes {dimension_semantics = [#tpu.dimension_semantics<parallel>], iteration_bounds = array<i64: 1>, scalar_prefetch = 0 : i64, scratch_operands = 0 : i64, tpu.core_type = #tpu.core_type<tc>, window_params = [{transform_indices = @transform_0, window_bounds = array<i64: 10, 128>}, {transform_indices = @transform_1, window_bounds = array<i64: 1, 128>}, {pipeline_mode = #tpu.pipeline_mode<synchronous>, transform_indices = @transform_2, window_bounds = array<i64: 10, 1>}, {transform_indices = @transform_3, window_bounds = array<i64: 1, 8, 128>}, {transform_indices = @transform_4, window_bounds = array<i64: 1, 8, 128>}]} {
    %c0 = arith.constant 0 : index
    %c0_0 = arith.constant 0 : index
    %0 = vector.load %arg1[%c0, %c0_0] : memref<10x128xbf16, #tpu.memory_space<vmem>>, vector<10x128xbf16>
    %1 = arith.extf %0 : vector<10x128xbf16> to vector<10x128xf32>
    %c0_1 = arith.constant 0 : index
    %c0_2 = arith.constant 0 : index
    %2 = vector.load %arg3[%c0_1, %c0_2] : memref<10x1xf32, #tpu.memory_space<vmem>>, vector<10x1xf32>
    %c0_3 = arith.constant 0 : index
    %c0_4 = arith.constant 0 : index
    %3 = vector.load %arg2[%c0_3, %c0_4] : memref<1x128xi32, #tpu.memory_space<vmem>>, vector<1x128xi32>
    %cst = arith.constant dense<0xFF800000> : vector<128xf32>
    %4 = vector.multi_reduction <maximumf>, %1, %cst [0] : vector<10x128xf32> to vector<128xf32>
    %5 = vector.shape_cast %4 : vector<128xf32> to vector<1x128xf32>
    %6 = vector.broadcast %5 : vector<1x128xf32> to vector<10x128xf32>
    %7 = arith.subf %1, %6 : vector<10x128xf32>
    %8 = math.exp %7 : vector<10x128xf32>
    %cst_5 = arith.constant dense<0.000000e+00> : vector<128xf32>
    %9 = vector.multi_reduction <add>, %8, %cst_5 [0] : vector<10x128xf32> to vector<128xf32>
    %10 = vector.shape_cast %9 : vector<128xf32> to vector<1x128xf32>
    %11 = math.log %10 : vector<1x128xf32>
    %12 = tpu.iota {dimensions = array<i32: 0>} : vector<10x128xi32>
    %13 = vector.broadcast %3 : vector<1x128xi32> to vector<10x128xi32>
    %14 = arith.cmpi eq, %12, %13 : vector<10x128xi32>
    %cst_6 = arith.constant 0.000000e+00 : f32
    %15 = vector.broadcast %cst_6 : f32 to vector<10x128xf32>
    %16 = arith.select %14, %7, %15 : vector<10x128xi1>, vector<10x128xf32>
    %cst_7 = arith.constant dense<0.000000e+00> : vector<128xf32>
    %17 = vector.multi_reduction <add>, %16, %cst_7 [0] : vector<10x128xf32> to vector<128xf32>
    %18 = vector.shape_cast %17 : vector<128xf32> to vector<1x128xf32>
    %cst_8 = arith.constant 0.000000e+00 : f32
    %19 = vector.shape_cast %2 : vector<10x1xf32> to vector<10x1xf32>
    %20 = vector.broadcast %19 : vector<10x1xf32> to vector<10x128xf32>
    %21 = vector.broadcast %cst_8 : f32 to vector<10x128xf32>
    %22 = arith.select %14, %20, %21 : vector<10x128xi1>, vector<10x128xf32>
    %cst_9 = arith.constant dense<0.000000e+00> : vector<128xf32>
    %23 = vector.multi_reduction <add>, %22, %cst_9 [0] : vector<10x128xf32> to vector<128xf32>
    %24 = vector.shape_cast %23 : vector<128xf32> to vector<1x128xf32>
    %25 = arith.subf %18, %11 : vector<1x128xf32>
    %26 = math.exp %25 : vector<1x128xf32>
    %cst_10 = arith.constant 1.000000e+00 : f32
    %27 = vector.broadcast %cst_10 : f32 to vector<1x128xf32>
    %28 = arith.subf %27, %26 : vector<1x128xf32>
    %29 = arith.mulf %28, %28 : vector<1x128xf32>
    %30 = arith.mulf %29, %25 : vector<1x128xf32>
    %31 = arith.mulf %30, %24 : vector<1x128xf32>
    %32 = tpu.iota {dimensions = array<i32: 1>} : vector<1x128xi32>
    %c128_i32 = arith.constant 128 : i32
    %33 = arith.muli %arg0, %c128_i32 : i32
    %34 = vector.broadcast %33 : i32 to vector<1x128xi32>
    %35 = arith.addi %34, %32 : vector<1x128xi32>
    %c8_i32 = arith.constant 8 : i32
    %36 = vector.broadcast %c8_i32 : i32 to vector<1x128xi32>
    %37 = arith.cmpi slt, %35, %36 : vector<1x128xi32>
    %c-100_i32 = arith.constant -100 : i32
    %38 = vector.broadcast %c-100_i32 : i32 to vector<1x128xi32>
    %39 = arith.cmpi ne, %3, %38 : vector<1x128xi32>
    %40 = arith.andi %39, %37 : vector<1x128xi1>
    %cst_11 = arith.constant 0.000000e+00 : f32
    %41 = vector.broadcast %cst_11 : f32 to vector<1x128xf32>
    %42 = arith.subf %41, %31 : vector<1x128xf32>
    %cst_12 = arith.constant 0.000000e+00 : f32
    %43 = vector.broadcast %cst_12 : f32 to vector<1x128xf32>
    %44 = arith.select %40, %42, %43 : vector<1x128xi1>, vector<1x128xf32>
    %cst_13 = arith.constant dense<0.000000e+00> : vector<1xf32>
    %45 = vector.multi_reduction <add>, %44, %cst_13 [1] : vector<1x128xf32> to vector<1xf32>
    %46 = vector.shape_cast %45 : vector<1xf32> to vector<1x1xf32>
    %47 = arith.extui %40 : vector<1x128xi1> to vector<1x128xi32>
    %48 = arith.sitofp %47 : vector<1x128xi32> to vector<1x128xf32>
    %cst_14 = arith.constant dense<0.000000e+00> : vector<1xf32>
    %49 = vector.multi_reduction <add>, %48, %cst_14 [1] : vector<1x128xf32> to vector<1xf32>
    %50 = vector.shape_cast %49 : vector<1xf32> to vector<1x1xf32>
    %51 = vector.shape_cast %46 : vector<1x1xf32> to vector<1x1x1xf32>
    %52 = vector.shape_cast %51 : vector<1x1x1xf32> to vector<1x1x1xf32>
    %53 = vector.broadcast %52 : vector<1x1x1xf32> to vector<1x8x128xf32>
    %c0_15 = arith.constant 0 : index
    %c0_16 = arith.constant 0 : index
    %c0_17 = arith.constant 0 : index
    %54 = vector.load %arg4[%c0_15, %c0_16, %c0_17] : memref<1x8x128xf32, #tpu.memory_space<vmem>>, vector<1x8x128xf32>
    tpu.vector_store %arg4[%c0_15, %c0_16, %c0_17], %53 {strides = array<i32>} : memref<1x8x128xf32, #tpu.memory_space<vmem>>, vector<1x8x128xf32>,
    %55 = vector.shape_cast %50 : vector<1x1xf32> to vector<1x1x1xf32>
    %56 = vector.shape_cast %55 : vector<1x1x1xf32> to vector<1x1x1xf32>
    %57 = vector.broadcast %56 : vector<1x1x1xf32> to vector<1x8x128xf32>
    %c0_18 = arith.constant 0 : index
    %c0_19 = arith.constant 0 : index
    %c0_20 = arith.constant 0 : index
    %58 = vector.load %arg5[%c0_18, %c0_19, %c0_20] : memref<1x8x128xf32, #tpu.memory_space<vmem>>, vector<1x8x128xf32>
    tpu.vector_store %arg5[%c0_18, %c0_19, %c0_20], %57 {strides = array<i32>} : memref<1x8x128xf32, #tpu.memory_space<vmem>>, vector<1x8x128xf32>,
    return
  }
  func.func @transform_0(%arg0: i32) -> (i32, i32) {
    %c0_i32 = arith.constant 0 : i32
    %c0_i32_0 = arith.constant 0 : i32
    return %c0_i32, %arg0 : i32, i32
  }
  func.func @transform_1(%arg0: i32) -> (i32, i32) {
    %c0_i32 = arith.constant 0 : i32
    %c0_i32_0 = arith.constant 0 : i32
    return %c0_i32, %arg0 : i32, i32
  }
  func.func @transform_2(%arg0: i32) -> (i32, i32) {
    %c0_i32 = arith.constant 0 : i32
    %c0_i32_0 = arith.constant 0 : i32
    %c0_i32_1 = arith.constant 0 : i32
    return %c0_i32, %c0_i32_0 : i32, i32
  }
  func.func @transform_3(%arg0: i32) -> (i32, i32, i32) {
    %c0_i32 = arith.constant 0 : i32
    %c0_i32_0 = arith.constant 0 : i32
    %c0_i32_1 = arith.constant 0 : i32
    return %arg0, %c0_i32, %c0_i32_0 : i32, i32, i32
  }
  func.func @transform_4(%arg0: i32) -> (i32, i32, i32) {
    %c0_i32 = arith.constant 0 : i32
    %c0_i32_0 = arith.constant 0 : i32
    %c0_i32_1 = arith.constant 0 : i32
    return %arg0, %c0_i32, %c0_i32_0 : i32, i32, i32
  }
}

</mosaic_0001>

<bundles_post_ra>
// kernel: tpu_custom_call.1
= control target key start
LH: loop header
LB: loop body
LE: loop exit
PB: predicated region body
PF: predicated region fallthrough
CT: control target
= control target key end

     0   :  { %10 = vsyncpa [#allocation3], 0  ;;  %v215_v1 = vmov 0   ;;  %s296_s0 = inlined_call_operand.vmem [shape: bf16[10,8], index: 0, kind: input, shape index: {}]   ;;  %s297_s1 = inlined_call_operand.vmem [shape: s32[1,8], index: 1, kind: input, shape index: {}]   ;;  %s298_s2 = inlined_call_operand.vmem [shape: f32[10,1], index: 2, kind: input, shape index: {}]   ;;  %s299_s3 = inlined_call_operand.hbm [shape: f32[1,8,128], index: 3, kind: output, shape index: {0}]   ;;  %s300_s4 = inlined_call_operand.hbm [shape: f32[1,8,128], index: 4, kind: output, shape index: {1}]  }
   0x1   :  { %v23_v0 = vld [vmem:[%s298_s2 + $0x8] sm:$0x3]  ;;  %158 = vset.pattern.permute.xlu0 %v215_v1 }
   0x2   :  { %76 = vperm.xlu0 %158, %v23_v0  }
   0x3   :  { %11 = vsyncpa [#allocation5], 0  ;;  %v22_v2 = vld [vmem:[%s298_s2] sm:$0xff]  ;;  %vm25_vm0 = vcmask 1041408   ;;  %v50_v19 = vlaneseq  ;;  %vm106_vm6 = vcmask 1040384   ;;  %s218_s24 = smov [#allocation4]  }
   0x4   :  { %v19_v3 = vld [vmem:[%s296_s0 + $0x4] sm:$0x1]  ;;  %v18_v4 = vld [vmem:[%s296_s0] sm:$0xf]  ;;  %s141_s25 = sshll.u32 %s218_s24, 4  ;;  %s142_s25 = int_to_ptr.vmem [resolvable:$true] %s141_s25 }
   0x5   :  { %v21_v5 = vunpack.c.l.bf16 %v19_v3  ;;  %v20_v6 = vunpack.c.l.bf16 %v18_v4  ;;  %v51_v21 = vshrl.u32 %v50_v19, 7  ;;  %v24_v26 = vld [vmem:[%s297_s1] sm:$0x1]  ;;  %v97_v62 = vand.u32 127, %v50_v19  ;;  %s217_s1 = smov [#allocation2]  }
   0x6   :  { %71 = vperm.xlu0 %158, %v22_v2   ;;  %vm102_vm4 = vcmp.ne.s32.totalorder %v24_v26, 4294967196  ;;  %s131_s23 = sshll.u32 %s217_s1, 4  ;;  %s132_s23 = int_to_ptr.vmem [resolvable:$true] %s131_s23 }
   0x7   :  { %v26_v7 = vsel %vm25_vm0, %v21_v5, -inf  ;;  %v258_v24 = vsub.s32 0, %v51_v21  ;;  %v52_v27 = vadd.s32 8, %v51_v21  ;;  %vm101_vm3 = vcmp.lt.s32.totalorder %v97_v62, 8  ;;  %s167_s26 = scalar_lea.vmem %s132_s23, 128  ;;  %p172_p1 = scmp.lt.s32.totalorder %s132_s23, %s132_s23 }
   0x8   :  { %v27_v8 = vmax.f32 %v20_v6, %v26_v7  ;;  %vm103_vm5 = vmand %vm102_vm4, %vm101_vm3  ;;  %p168_p0 = scmp.ne.s32.totalorder %s132_s23, %s167_s26  ;;  %p173_p2 = scmp.lt.s32.totalorder %s167_s26, %s167_s26 }
   0x9   :  { %v56_v28 = vrot.slane %v24_v26, %v258_v24 }
   0xa   :  { %v28_v9 = vrot.slane %v27_v8, 4  ;;  %p174_p3 = por %p173_p2, %p172_p1 }
   0xb   :  { %vm58_vm1 = vcmp.eq.s32.totalorder %v52_v27, %v56_v28  ;;  %vm57_vm2 = vcmp.eq.s32.totalorder %v51_v21, %v56_v28 }
   0xc   :  { %v29_v10 = vmax.f32 %v27_v8, %v28_v9  ;;  %p175_p4 = pnand %p174_p3, %p168_p0 }
   0xe   :  { %v30_v11 = vrot.slane %v29_v10, 2 }
  0x10   :  { %v31_v12 = vmax.f32 %v29_v10, %v30_v11 }
  0x12   :  { %v32_v13 = vrot.slane %v31_v12, 1 }
  0x14   :  { %v33_v14 = vmax.f32 %v31_v12, %v32_v13 }
  0x16   :  { %v35_v15 = vsub.f32 %v21_v5, %v33_v14  ;;  %v34_v16 = vsub.f32 %v20_v6, %v33_v14  ;;  %v216_v5 = vmov 0.0  }
  0x17   :  { %v153_v6 = vsel %vm103_vm5, 1.0, %v216_v5 }
  0x18   :  { %v38_v17 = vmul.f32 1.442695, %v35_v15  ;;  %v36_v18 = vmul.f32 1.442695, %v34_v16  ;;  %v60_v31 = vsel %vm58_vm1, %v35_v15, 0.0  ;;  %v59_v34 = vsel %vm57_vm2, %v34_v16, 0.0 }
  0x19   :  { %v61_v33 = vsel %vm25_vm0, %v60_v31, 0.0  ;;  %v112_v8 = vsel %vm106_vm6, %v153_v6, 0.0 }
  0x1a   :  { %159 = vpow2.f32 %v38_v17  ;;  %v62_v36 = vadd.f32 %v61_v33, %v59_v34 }
  0x1b   :  { %161 = vpow2.f32 %v36_v18 }
  0x1c   :  { %v63_v38 = vrot.slane %v62_v36, 4 }
  0x1e   :  { %v64_v40 = vadd.f32 %v63_v38, %v62_v36 }
  0x20   :  { %v65_v41 = vrot.slane %v64_v40, 2 }
  0x22   :  { %v66_v42 = vadd.f32 %v65_v41, %v64_v40 }
  0x24   :  { %v160_v20 = vpop.eup %159  ;;  %v67_v43 = vrot.slane %v66_v42, 1 }
  0x25   :  { %v162_v22 = vpop.eup %161  ;;  %v40_v23 = vsel %vm25_vm0, %v160_v20, 0.0 }
  0x26   :  { %v41_v25 = vadd.f32 %v162_v22, %v40_v23  ;;  %v68_v46 = vadd.f32 %v67_v43, %v66_v42 }
  0x28   :  { %v42_v29 = vrot.slane %v41_v25, 4 }
  0x2a   :  { %v43_v30 = vadd.f32 %v42_v29, %v41_v25 }
  0x2c   :  { %v44_v32 = vrot.slane %v43_v30, 2 }
  0x2e   :  { %v45_v35 = vadd.f32 %v44_v32, %v43_v30 }
  0x30   :  { %v46_v37 = vrot.slane %v45_v35, 1 }
  0x32   :  { %v47_v39 = vadd.f32 %v46_v37, %v45_v35 }
  0x34   :  { %163 = vlog2.f32 %v47_v39 }
  0x3e   :  { %v164_v44 = vpop.eup %163 }
  0x3f   :  { %v49_v45 = vmul.f32 0.6931472, %v164_v44 }
  0x41   :  { %v89_v47 = vsub.f32 %v68_v46, %v49_v45 }
  0x43   :  { %v90_v48 = vmul.f32 1.442695, %v89_v47 }
  0x45   :  { %165 = vpow2.f32 %v90_v48 }
  0x4f   :  { %v166_v52 = vpop.eup %165 }
  0x50   :  { %v92_v57 = vsub.f32 1.0, %v166_v52 }
  0x52   :  { %v93_v60 = vmul.f32 %v92_v57, %v92_v57 }
  0x54   :  { %v94_v0 = vmul.f32 %v93_v60, %v89_v47 }
  0x81   :  { %v77_v49 = vpop.permute.xlu0 %76 }
  0x82   :  { %v80_v50 = vsel %vm58_vm1, %v77_v49, 0.0 }
  0x83   :  { %v81_v53 = vsel %vm25_vm0, %v80_v50, 0.0 }
  0x85   :  { %v72_v51 = vpop.permute.xlu0 %71 }
  0x86   :  { %v79_v54 = vsel %vm57_vm2, %v72_v51, 0.0 }
  0x87   :  { %v82_v55 = vadd.f32 %v81_v53, %v79_v54 }
  0x89   :  { %v83_v56 = vrot.slane %v82_v55, 4 }
  0x8b   :  { %v84_v58 = vadd.f32 %v83_v56, %v82_v55 }
  0x8d   :  { %v85_v59 = vrot.slane %v84_v58, 2 }
  0x8f   :  { %v86_v61 = vadd.f32 %v85_v59, %v84_v58 }
  0x91   :  { %v87_v63 = vrot.slane %v86_v61, 1 }
  0x93   :  { %v88_v1 = vadd.f32 %v87_v63, %v86_v61 }
  0x95   :  { %v95_v2 = vmul.f32 %v94_v0, %v88_v1 }
  0x97   :  { %v104_v3 = vsub.f32 0.0, %v95_v2 }
  0x99   :  { %v105_v4 = vsel %vm103_vm5, %v104_v3, 0.0 }
  0x9a   :  { %v107_v7 = vsel %vm106_vm6, %v105_v4, 0.0 }
  0x9b   :  { %108 = vadd.xlane.f32.xlu1 %v107_v7 }
  0x9f   :  { %113 = vadd.xlane.f32.xlu1 %v112_v8 }
 0x128   :  { %v109_v9 = vpop.xlane.xlu1 %108 }
 0x129   :  { %v118_v10 = vrot.slane %v109_v9, %v258_v24 }
 0x12b   :  { %119 = vst [vmem:[#allocation2] sm:$0xff] %v118_v10 }
 0x12c   :  { %v114_v11 = vpop.xlane.xlu1 %113 }
 0x12d   :  { %178 = shalt.err (!%p175_p4)
}
 0x12e   :  { %s179_s29 = scalar_lea.hbm %s299_s3, 128 }
 0x12f   :  { %p180_p5 = scmp.ne.s32.totalorder %s299_s3, %s179_s29  ;;  %p183_p6 = scmp.lt.u32.totalorder %s179_s29, %s299_s3 }
 0x131   :  { %p185_p7 = pnand %p183_p6, %p180_p5 }
 0x133   :  { %188 = shalt.err (!%p185_p7)
}
 0x134   :  { %134 = dma.vmem_to_hbm [thread:$0]  %s132_s23, 128, %s299_s3, [#allocation3]   ;;  %v123_v12 = vrot.slane %v114_v11, %v258_v24 }
 0x135   :  { %s189_s10 = scalar_lea.vmem %s142_s25, 128  ;;  %p194_p9 = scmp.lt.s32.totalorder %s142_s25, %s142_s25 }
 0x136   :  { %124 = vst [vmem:[#allocation4] sm:$0xff] %v123_v12  ;;  %p190_p8 = scmp.ne.s32.totalorder %s142_s25, %s189_s10  ;;  %p195_p10 = scmp.lt.s32.totalorder %s189_s10, %s189_s10 }
 0x138   :  { %p196_p11 = por %p195_p10, %p194_p9 }
 0x13a   :  { %p197_p12 = pnand %p196_p11, %p190_p8 }
 0x13c   :  { %200 = shalt.err (!%p197_p12)
}
 0x13d   :  { %s201_s13 = scalar_lea.hbm %s300_s4, 128 }
 0x13e   :  { %p202_p13 = scmp.ne.s32.totalorder %s300_s4, %s201_s13  ;;  %p205_p0 = scmp.lt.u32.totalorder %s201_s13, %s300_s4 }
 0x140   :  { %p207_p1 = pnand %p205_p0, %p202_p13 }
 0x142   :  { %210 = shalt.err (!%p207_p1)
}
 0x143   :  { %144 = dma.vmem_to_hbm [thread:$0]  %s142_s25, 128, %s300_s4, [#allocation5]  }
 0x144   :  { %211 = dma.done.wait [#allocation3], 128  }
 0x145   :  { %212 = vsyncadd [#allocation3], 4294967168 }
 0x146   :  { %213 = dma.done.wait [#allocation5], 128  }
 0x147   :  { %214 = vsyncadd [#allocation5], 4294967168 }
 0x148   :  { %151 = vsyncpa [#allocation3], 1 }
 0x149   :  { %152 = vsyncpa [#allocation5], 1 }

</bundles_post_ra>
